<compile_context>
chip_gen: v7x
topology: tpu7x:2x2x1
jax: 0.10.0
libtpu: 0.0.40
codegen_flags: <defaults>
</compile_context>

<pallas_src>
import functools

import jax
import jax.numpy as jnp
from jax import lax
from jax.experimental import pallas as pl
from jax.experimental.pallas import tpu as pltpu


# ---------------------------------------------------------------------------
# Helpers
# ---------------------------------------------------------------------------

def _pick_tile(n_pad, max_tile):
    """Largest multiple of 128 that divides n_pad, capped at max_tile."""
    t = min(max_tile, n_pad)
    t -= t % 128
    while n_pad % t:
        t -= 128
    return t


# ---------------------------------------------------------------------------
# Kernels
# ---------------------------------------------------------------------------

def _mlp_fc_kernel(feats_ref, pos_ref, w1f_ref, w1p_ref, b1_ref,
                   w2f_ref, w2p_ref, b2_ref, wfc_ref, bfc_ref, f_ref):
    """Per row-tile: f = fc(layer2(layer1(feats, pos), pos))  (fc applied once)."""
    feats = feats_ref[...]                       # [T, C]
    pos = pos_ref[...]                           # [T, 3]
    p_dim = pos.shape[1]

    def pos_proj(wp_ref):
        # pos @ Wp as p_dim broadcast FMAs on the VPU (K=3 MXU matmul avoided).
        wp = wp_ref[...]                         # [3, C]
        acc = pos[:, 0:1] * wp[0:1, :]
        for k in range(1, p_dim):
            acc = acc + pos[:, k:k + 1] * wp[k:k + 1, :]
        return acc                               # [T, C]

    # layer1: relu(feats @ W1f + pos @ W1p + b1)
    h1 = jnp.dot(feats, w1f_ref[...], preferred_element_type=jnp.float32)
    h1 = jnp.maximum(h1 + pos_proj(w1p_ref) + b1_ref[...], 0.0)

    # layer2: relu(h1 @ W2f + pos @ W2p + b2)
    h2 = jnp.dot(h1, w2f_ref[...], preferred_element_type=jnp.float32)
    h2 = jnp.maximum(h2 + pos_proj(w2p_ref) + b2_ref[...], 0.0)

    # fc applied once: in the PyTorch forward f2 is bit-identical to f1.
    f_ref[...] = (jnp.dot(h2, wfc_ref[...], preferred_element_type=jnp.float32)
                  + bfc_ref[...])


def _gram_sigmoid_resident_kernel(fi_ref, fall_ref, out_ref, *, tile_j):
    """Output tile (i, j): sigmoid(f_i @ f_j^T), column operand resident in VMEM."""
    j0 = pl.multiple_of(pl.program_id(1) * tile_j, 128)
    fj = fall_ref[pl.ds(j0, tile_j), :]                        # slice, no DMA
    g = lax.dot_general(
        fi_ref[...], fj,
        dimension_numbers=(((1,), (1,)), ((), ())),            # contract D/D, no .T
        preferred_element_type=jnp.float32,
    )
    out_ref[...] = jax.nn.sigmoid(g)


def _gram_sigmoid_tiled_kernel(fi_ref, fj_ref, out_ref):
    """Fallback for very large N: column operand streamed per tile."""
    g = lax.dot_general(
        fi_ref[...], fj_ref[...],
        dimension_numbers=(((1,), (1,)), ((), ())),
        preferred_element_type=jnp.float32,
    )
    out_ref[...] = jax.nn.sigmoid(g)


# ---------------------------------------------------------------------------
# Wrapper
# ---------------------------------------------------------------------------

def tracing_wrapper_forward(feats, pos, params):
    """feats: [1, N, C] or [N, C]; pos: [1, N, 3] or [N, 3]. Returns [N, N]."""
    if feats.ndim == 3:
        feats = feats[0]
    if pos.ndim == 3:
        pos = pos[0]

    n, c = feats.shape
    p_dim = pos.shape[1]
    d = params["wfc"].shape[1]

    # Pad the point count to a lane-dense multiple of 128 only (tile sizes are
    # decoupled from the padding granularity below). Padded rows only touch
    # Gram rows/cols that are sliced away at the end.
    n_pad = 128 * pl.cdiv(n, 128)
    if n_pad != n:
        feats = jnp.pad(feats, ((0, n_pad - n), (0, 0)))
        pos = jnp.pad(pos, ((0, n_pad - n), (0, 0)))

    # Tile choices: large tiles to amortize per-grid-step overhead, but always
    # dividing n_pad so small N never gets padded up to a big Gram tile.
    row_tile = _pick_tile(n_pad, 1024)    # phase-1 (MLP+fc) row tile
    gram_tile = _pick_tile(n_pad, 512)    # phase-2 output tile, safe on all gens

    # ---- Phase 1: per-row-tile MLP + fc -> f [n_pad, D] ---------------------
    f = pl.pallas_call(
        _mlp_fc_kernel,
        out_shape=jax.ShapeDtypeStruct((n_pad, d), jnp.float32),
        grid=(n_pad // row_tile,),
        in_specs=[
            pl.BlockSpec((row_tile, c), lambda i: (i, 0)),      # feats
            pl.BlockSpec((row_tile, p_dim), lambda i: (i, 0)),  # pos
            pl.BlockSpec((c, c), lambda i: (0, 0)),             # W1f
            pl.BlockSpec((p_dim, c), lambda i: (0, 0)),         # W1p
            pl.BlockSpec((1, c), lambda i: (0, 0)),             # b1
            pl.BlockSpec((c, c), lambda i: (0, 0)),             # W2f
            pl.BlockSpec((p_dim, c), lambda i: (0, 0)),         # W2p
            pl.BlockSpec((1, c), lambda i: (0, 0)),             # b2
            pl.BlockSpec((c, d), lambda i: (0, 0)),             # Wfc
            pl.BlockSpec((1, d), lambda i: (0, 0)),             # bfc
        ],
        out_specs=pl.BlockSpec((row_tile, d), lambda i: (i, 0)),
        compiler_params=pltpu.CompilerParams(
            dimension_semantics=("parallel",)),
    )(feats, pos, params["w1f"], params["w1p"], params["b1"],
      params["w2f"], params["w2p"], params["b2"], params["wfc"], params["bfc"])

    # ---- Phase 2: tiled Gram + sigmoid, lane-dense output tiles -------------
    n_tiles = n_pad // gram_tile
    # Keep f fully VMEM-resident for the column operand when small enough
    # (n_pad * D * 4 B); fall back to a streamed tile spec otherwise.
    f_resident = n_pad * d * 4 <= (4 << 20)
    if f_resident:
        col_spec = pl.BlockSpec((n_pad, d), lambda i, j: (0, 0))
        gram_kernel = functools.partial(_gram_sigmoid_resident_kernel,
                                        tile_j=gram_tile)
    else:
        col_spec = pl.BlockSpec((gram_tile, d), lambda i, j: (j, 0))
        gram_kernel = _gram_sigmoid_tiled_kernel

    logits_pad = pl.pallas_call(
        gram_kernel,
        out_shape=jax.ShapeDtypeStruct((n_pad, n_pad), jnp.float32),
        grid=(n_tiles, n_tiles),
        in_specs=[
            pl.BlockSpec((gram_tile, d), lambda i, j: (i, 0)),  # f row tile
            col_spec,                                           # f columns
        ],
        out_specs=pl.BlockSpec((gram_tile, gram_tile), lambda i, j: (i, j)),
        compiler_params=pltpu.CompilerParams(
            dimension_semantics=("parallel", "parallel")),
    )(f, f)

    return logits_pad[:n, :n]


# ---------------------------------------------------------------------------
# Parameters + pure-JAX reference
# ---------------------------------------------------------------------------

def init_params(key, c=32, d=16, pos_dim=3):
    ks = jax.random.split(key, 8)
    scale = 0.1
    return {
        "w1f": scale * jax.random.normal(ks[0], (c, c), jnp.float32),
        "w1p": scale * jax.random.normal(ks[1], (pos_dim, c), jnp.float32),
        "b1": scale * jax.random.normal(ks[2], (1, c), jnp.float32),
        "w2f": scale * jax.random.normal(ks[3], (c, c), jnp.float32),
        "w2p": scale * jax.random.normal(ks[4], (pos_dim, c), jnp.float32),
        "b2": scale * jax.random.normal(ks[5], (1, c), jnp.float32),
        "wfc": scale * jax.random.normal(ks[6], (c, d), jnp.float32),
        "bfc": scale * jax.random.normal(ks[7], (1, d), jnp.float32),
    }


def _reference_forward(feats, pos, p):
    """Pure-JAX reference of the same forward (matches the PyTorch wrapper)."""
    f, q = feats[0], pos[0]
    h1 = jnp.maximum(f @ p["w1f"] + q @ p["w1p"] + p["b1"], 0.0)
    h2 = jnp.maximum(h1 @ p["w2f"] + q @ p["w2p"] + p["b2"], 0.0)
    f1 = h2 @ p["wfc"] + p["bfc"]
    f2 = h2 @ p["wfc"] + p["bfc"]
    return jax.nn.sigmoid(f1 @ f2.T)


if __name__ == "__main__":
    # TODO(synk): the wrapped model's layer1/layer2/fc are unspecified in the
    # source file; they are synthesized here as point-transformer-style blocks.
    N, C, D, POS = 64, 32, 16, 3

    key = jax.random.PRNGKey(0)
    k_feats, k_pos, k_params = jax.random.split(key, 3)

    feats = jax.random.normal(k_feats, (1, N, C), jnp.float32)   # [1, N, C]
    pos = jax.random.normal(k_pos, (1, N, POS), jnp.float32)     # [1, N, 3]
    params = init_params(k_params, c=C, d=D, pos_dim=POS)

    logits = tracing_wrapper_forward(feats, pos, params)
    logits = jax.block_until_ready(logits)

    ref = _reference_forward(feats, pos, params)
    assert logits.shape == (N, N)
    assert jnp.allclose(logits, ref, atol=1e-4, rtol=1e-4)

    print("KERNEL_OK")
</pallas_src>

<mosaic_0001>
module attributes {stable_mosaic.version = 11 : i64} {
  func.func @_mlp_fc_kernel(%arg0: i32, %arg1: memref<128x32xf32, #tpu.memory_space<vmem>>, %arg2: memref<128x3xf32, #tpu.memory_space<vmem>>, %arg3: memref<32x32xf32, #tpu.memory_space<vmem>>, %arg4: memref<3x32xf32, #tpu.memory_space<vmem>>, %arg5: memref<1x32xf32, #tpu.memory_space<vmem>>, %arg6: memref<32x32xf32, #tpu.memory_space<vmem>>, %arg7: memref<3x32xf32, #tpu.memory_space<vmem>>, %arg8: memref<1x32xf32, #tpu.memory_space<vmem>>, %arg9: memref<32x16xf32, #tpu.memory_space<vmem>>, %arg10: memref<1x16xf32, #tpu.memory_space<vmem>>, %arg11: memref<128x16xf32, #tpu.memory_space<vmem>>) attributes {dimension_semantics = [#tpu.dimension_semantics<parallel>], iteration_bounds = array<i64: 1>, scalar_prefetch = 0 : i64, scratch_operands = 0 : i64, tpu.core_type = #tpu.core_type<tc>, window_params = [{transform_indices = @transform_0, window_bounds = array<i64: 128, 32>}, {transform_indices = @transform_1, window_bounds = array<i64: 128, 3>}, {pipeline_mode = #tpu.pipeline_mode<synchronous>, transform_indices = @transform_2, window_bounds = array<i64: 32, 32>}, {pipeline_mode = #tpu.pipeline_mode<synchronous>, transform_indices = @transform_3, window_bounds = array<i64: 3, 32>}, {pipeline_mode = #tpu.pipeline_mode<synchronous>, transform_indices = @transform_4, window_bounds = array<i64: 1, 32>}, {pipeline_mode = #tpu.pipeline_mode<synchronous>, transform_indices = @transform_5, window_bounds = array<i64: 32, 32>}, {pipeline_mode = #tpu.pipeline_mode<synchronous>, transform_indices = @transform_6, window_bounds = array<i64: 3, 32>}, {pipeline_mode = #tpu.pipeline_mode<synchronous>, transform_indices = @transform_7, window_bounds = array<i64: 1, 32>}, {pipeline_mode = #tpu.pipeline_mode<synchronous>, transform_indices = @transform_8, window_bounds = array<i64: 32, 16>}, {pipeline_mode = #tpu.pipeline_mode<synchronous>, transform_indices = @transform_9, window_bounds = array<i64: 1, 16>}, {transform_indices = @transform_10, window_bounds = array<i64: 128, 16>}]} {
    %c0 = arith.constant 0 : index
    %c0_0 = arith.constant 0 : index
    %0 = vector.load %arg1[%c0, %c0_0] : memref<128x32xf32, #tpu.memory_space<vmem>>, vector<128x32xf32>
    %c0_1 = arith.constant 0 : index
    %c0_2 = arith.constant 0 : index
    %1 = vector.load %arg2[%c0_1, %c0_2] : memref<128x3xf32, #tpu.memory_space<vmem>>, vector<128x3xf32>
    %c0_3 = arith.constant 0 : index
    %c0_4 = arith.constant 0 : index
    %2 = vector.load %arg3[%c0_3, %c0_4] : memref<32x32xf32, #tpu.memory_space<vmem>>, vector<32x32xf32>
    %cst = arith.constant dense<0.000000e+00> : vector<128x32xf32>
    %3 = tpu.matmul %0, %2, %cst {dimension_numbers = #tpu.dot_dimension_numbers<[1], [0], [0], [1], [0, 0, 1, 1], [], []>} : vector<128x32xf32>, vector<32x32xf32>, vector<128x32xf32> -> vector<128x32xf32>
    %c0_5 = arith.constant 0 : index
    %c0_6 = arith.constant 0 : index
    %4 = vector.load %arg4[%c0_5, %c0_6] : memref<3x32xf32, #tpu.memory_space<vmem>>, vector<3x32xf32>
    %5 = vector.extract_strided_slice %1 {offsets = [0, 0], sizes = [128, 1], strides = [1, 1]} : vector<128x3xf32> to vector<128x1xf32>
    %6 = vector.extract_strided_slice %4 {offsets = [0, 0], sizes = [1, 32], strides = [1, 1]} : vector<3x32xf32> to vector<1x32xf32>
    %7 = vector.broadcast %5 : vector<128x1xf32> to vector<128x32xf32>
    %8 = vector.broadcast %6 : vector<1x32xf32> to vector<128x32xf32>
    %9 = arith.mulf %7, %8 : vector<128x32xf32>
    %10 = vector.extract_strided_slice %1 {offsets = [0, 1], sizes = [128, 1], strides = [1, 1]} : vector<128x3xf32> to vector<128x1xf32>
    %11 = vector.extract_strided_slice %4 {offsets = [1, 0], sizes = [1, 32], strides = [1, 1]} : vector<3x32xf32> to vector<1x32xf32>
    %12 = vector.broadcast %10 : vector<128x1xf32> to vector<128x32xf32>
    %13 = vector.broadcast %11 : vector<1x32xf32> to vector<128x32xf32>
    %14 = arith.mulf %12, %13 : vector<128x32xf32>
    %15 = arith.addf %9, %14 : vector<128x32xf32>
    %16 = vector.extract_strided_slice %1 {offsets = [0, 2], sizes = [128, 1], strides = [1, 1]} : vector<128x3xf32> to vector<128x1xf32>
    %17 = vector.extract_strided_slice %4 {offsets = [2, 0], sizes = [1, 32], strides = [1, 1]} : vector<3x32xf32> to vector<1x32xf32>
    %18 = vector.broadcast %16 : vector<128x1xf32> to vector<128x32xf32>
    %19 = vector.broadcast %17 : vector<1x32xf32> to vector<128x32xf32>
    %20 = arith.mulf %18, %19 : vector<128x32xf32>
    %21 = arith.addf %15, %20 : vector<128x32xf32>
    %22 = arith.addf %3, %21 : vector<128x32xf32>
    %c0_7 = arith.constant 0 : index
    %c0_8 = arith.constant 0 : index
    %23 = vector.load %arg5[%c0_7, %c0_8] : memref<1x32xf32, #tpu.memory_space<vmem>>, vector<1x32xf32>
    %24 = vector.broadcast %23 : vector<1x32xf32> to vector<128x32xf32>
    %25 = arith.addf %22, %24 : vector<128x32xf32>
    %cst_9 = arith.constant 0.000000e+00 : f32
    %26 = vector.broadcast %cst_9 : f32 to vector<128x32xf32>
    %27 = arith.maximumf %25, %26 : vector<128x32xf32>
    %c0_10 = arith.constant 0 : index
    %c0_11 = arith.constant 0 : index
    %28 = vector.load %arg6[%c0_10, %c0_11] : memref<32x32xf32, #tpu.memory_space<vmem>>, vector<32x32xf32>
    %cst_12 = arith.constant dense<0.000000e+00> : vector<128x32xf32>
    %29 = tpu.matmul %27, %28, %cst_12 {dimension_numbers = #tpu.dot_dimension_numbers<[1], [0], [0], [1], [0, 0, 1, 1], [], []>} : vector<128x32xf32>, vector<32x32xf32>, vector<128x32xf32> -> vector<128x32xf32>
    %c0_13 = arith.constant 0 : index
    %c0_14 = arith.constant 0 : index
    %30 = vector.load %arg7[%c0_13, %c0_14] : memref<3x32xf32, #tpu.memory_space<vmem>>, vector<3x32xf32>
    %31 = vector.extract_strided_slice %1 {offsets = [0, 0], sizes = [128, 1], strides = [1, 1]} : vector<128x3xf32> to vector<128x1xf32>
    %32 = vector.extract_strided_slice %30 {offsets = [0, 0], sizes = [1, 32], strides = [1, 1]} : vector<3x32xf32> to vector<1x32xf32>
    %33 = vector.broadcast %31 : vector<128x1xf32> to vector<128x32xf32>
    %34 = vector.broadcast %32 : vector<1x32xf32> to vector<128x32xf32>
    %35 = arith.mulf %33, %34 : vector<128x32xf32>
    %36 = vector.extract_strided_slice %1 {offsets = [0, 1], sizes = [128, 1], strides = [1, 1]} : vector<128x3xf32> to vector<128x1xf32>
    %37 = vector.extract_strided_slice %30 {offsets = [1, 0], sizes = [1, 32], strides = [1, 1]} : vector<3x32xf32> to vector<1x32xf32>
    %38 = vector.broadcast %36 : vector<128x1xf32> to vector<128x32xf32>
    %39 = vector.broadcast %37 : vector<1x32xf32> to vector<128x32xf32>
    %40 = arith.mulf %38, %39 : vector<128x32xf32>
    %41 = arith.addf %35, %40 : vector<128x32xf32>
    %42 = vector.extract_strided_slice %1 {offsets = [0, 2], sizes = [128, 1], strides = [1, 1]} : vector<128x3xf32> to vector<128x1xf32>
    %43 = vector.extract_strided_slice %30 {offsets = [2, 0], sizes = [1, 32], strides = [1, 1]} : vector<3x32xf32> to vector<1x32xf32>
    %44 = vector.broadcast %42 : vector<128x1xf32> to vector<128x32xf32>
    %45 = vector.broadcast %43 : vector<1x32xf32> to vector<128x32xf32>
    %46 = arith.mulf %44, %45 : vector<128x32xf32>
    %47 = arith.addf %41, %46 : vector<128x32xf32>
    %48 = arith.addf %29, %47 : vector<128x32xf32>
    %c0_15 = arith.constant 0 : index
    %c0_16 = arith.constant 0 : index
    %49 = vector.load %arg8[%c0_15, %c0_16] : memref<1x32xf32, #tpu.memory_space<vmem>>, vector<1x32xf32>
    %50 = vector.broadcast %49 : vector<1x32xf32> to vector<128x32xf32>
    %51 = arith.addf %48, %50 : vector<128x32xf32>
    %cst_17 = arith.constant 0.000000e+00 : f32
    %52 = vector.broadcast %cst_17 : f32 to vector<128x32xf32>
    %53 = arith.maximumf %51, %52 : vector<128x32xf32>
    %c0_18 = arith.constant 0 : index
    %c0_19 = arith.constant 0 : index
    %54 = vector.load %arg9[%c0_18, %c0_19] : memref<32x16xf32, #tpu.memory_space<vmem>>, vector<32x16xf32>
    %cst_20 = arith.constant dense<0.000000e+00> : vector<128x16xf32>
    %55 = tpu.matmul %53, %54, %cst_20 {dimension_numbers = #tpu.dot_dimension_numbers<[1], [0], [0], [1], [0, 0, 1, 1], [], []>} : vector<128x32xf32>, vector<32x16xf32>, vector<128x16xf32> -> vector<128x16xf32>
    %c0_21 = arith.constant 0 : index
    %c0_22 = arith.constant 0 : index
    %56 = vector.load %arg10[%c0_21, %c0_22] : memref<1x16xf32, #tpu.memory_space<vmem>>, vector<1x16xf32>
    %57 = vector.broadcast %56 : vector<1x16xf32> to vector<128x16xf32>
    %58 = arith.addf %55, %57 : vector<128x16xf32>
    %c0_23 = arith.constant 0 : index
    %c0_24 = arith.constant 0 : index
    %59 = vector.load %arg11[%c0_23, %c0_24] : memref<128x16xf32, #tpu.memory_space<vmem>>, vector<128x16xf32>
    tpu.vector_store %arg11[%c0_23, %c0_24], %58 {strides = array<i32>} : memref<128x16xf32, #tpu.memory_space<vmem>>, vector<128x16xf32>,
    return
  }
  func.func @transform_0(%arg0: i32) -> (i32, i32) {
    %c0_i32 = arith.constant 0 : i32
    %c0_i32_0 = arith.constant 0 : i32
    return %arg0, %c0_i32 : i32, i32
  }
  func.func @transform_1(%arg0: i32) -> (i32, i32) {
    %c0_i32 = arith.constant 0 : i32
    %c0_i32_0 = arith.constant 0 : i32
    return %arg0, %c0_i32 : i32, i32
  }
  func.func @transform_2(%arg0: i32) -> (i32, i32) {
    %c0_i32 = arith.constant 0 : i32
    %c0_i32_0 = arith.constant 0 : i32
    %c0_i32_1 = arith.constant 0 : i32
    return %c0_i32, %c0_i32_0 : i32, i32
  }
  func.func @transform_3(%arg0: i32) -> (i32, i32) {
    %c0_i32 = arith.constant 0 : i32
    %c0_i32_0 = arith.constant 0 : i32
    %c0_i32_1 = arith.constant 0 : i32
    return %c0_i32, %c0_i32_0 : i32, i32
  }
  func.func @transform_4(%arg0: i32) -> (i32, i32) {
    %c0_i32 = arith.constant 0 : i32
    %c0_i32_0 = arith.constant 0 : i32
    %c0_i32_1 = arith.constant 0 : i32
    return %c0_i32, %c0_i32_0 : i32, i32
  }
  func.func @transform_5(%arg0: i32) -> (i32, i32) {
    %c0_i32 = arith.constant 0 : i32
    %c0_i32_0 = arith.constant 0 : i32
    %c0_i32_1 = arith.constant 0 : i32
    return %c0_i32, %c0_i32_0 : i32, i32
  }
  func.func @transform_6(%arg0: i32) -> (i32, i32) {
    %c0_i32 = arith.constant 0 : i32
    %c0_i32_0 = arith.constant 0 : i32
    %c0_i32_1 = arith.constant 0 : i32
    return %c0_i32, %c0_i32_0 : i32, i32
  }
  func.func @transform_7(%arg0: i32) -> (i32, i32) {
    %c0_i32 = arith.constant 0 : i32
    %c0_i32_0 = arith.constant 0 : i32
    %c0_i32_1 = arith.constant 0 : i32
    return %c0_i32, %c0_i32_0 : i32, i32
  }
  func.func @transform_8(%arg0: i32) -> (i32, i32) {
    %c0_i32 = arith.constant 0 : i32
    %c0_i32_0 = arith.constant 0 : i32
    %c0_i32_1 = arith.constant 0 : i32
    return %c0_i32, %c0_i32_0 : i32, i32
  }
  func.func @transform_9(%arg0: i32) -> (i32, i32) {
    %c0_i32 = arith.constant 0 : i32
    %c0_i32_0 = arith.constant 0 : i32
    %c0_i32_1 = arith.constant 0 : i32
    return %c0_i32, %c0_i32_0 : i32, i32
  }
  func.func @transform_10(%arg0: i32) -> (i32, i32) {
    %c0_i32 = arith.constant 0 : i32
    %c0_i32_0 = arith.constant 0 : i32
    return %arg0, %c0_i32 : i32, i32
  }
}

</mosaic_0001>

<bundles_post_ra>
// kernel: tpu_custom_call.1
= control target key start
LH: loop header
LB: loop body
LE: loop exit
PB: predicated region body
PF: predicated region fallthrough
CT: control target
= control target key end

     0   :  { %v1424_v0 = vmov 1   ;;  %v1425_v1 = vmov 0   ;;  %vm372_vm0 = vcmask 261120   ;;  %v1426_v16 = vmov 2   ;;  %s2136_s1 = inlined_call_operand.vmem [shape: f32[128,3], index: 1, kind: input, shape index: {}]   ;;  %s2137_s2 = inlined_call_operand.vmem [shape: f32[32,32], index: 2, kind: input, shape index: {}]   ;;  %s2138_s0 = inlined_call_operand.vmem [shape: f32[128,32], index: 0, kind: input, shape index: {}]   ;;  %s2139_s5 = inlined_call_operand.vmem [shape: f32[32,32], index: 5, kind: input, shape index: {}]   ;;  %s2140_s6 = inlined_call_operand.vmem [shape: f32[3,32], index: 6, kind: input, shape index: {}]   ;;  %s2141_s3 = inlined_call_operand.vmem [shape: f32[3,32], index: 3, kind: input, shape index: {}]   ;;  %s2142_s4 = inlined_call_operand.vmem [shape: f32[1,32], index: 4, kind: input, shape index: {}]   ;;  %s2143_s8 = inlined_call_operand.vmem [shape: f32[32,16], index: 8, kind: input, shape index: {}]   ;;  %s2144_s7 = inlined_call_operand.vmem [shape: f32[1,32], index: 7, kind: input, shape index: {}]   ;;  %s2145_s9 = inlined_call_operand.vmem [shape: f32[1,16], index: 9, kind: input, shape index: {}]   ;;  %s2146_s10 = inlined_call_operand.vmem [shape: f32[128,16], index: 10, kind: output, shape index: {}]  }
   0x1   :  { %1397 = vset.pattern.permute.xlu0 %v1424_v0  ;;  %1399 = vset.pattern.permute.xlu1 %v1425_v1  ;;  %v1487_v2 = vld [vmem:[%s2136_s1 + $0x8] sm:$0xff]  ;;  %v51_v3 = vld [vmem:[%s2136_s1] sm:$0xff]  ;;  %v69_v6 = vld [vmem:[%s2137_s2 + $0x10] sm:$0xff]  ;;  %v152_v46 = vlaneseq  ;;  %vm1138_vm1 = vcmask 130048  }
   0x2   :  { %v67_v4 = vld [vmem:[%s2137_s2] sm:$0xff]  ;;  %79 = vperm.xlu1 %1399, %v1487_v2   ;;  %173 = vperm.xlu0 %1397, %v51_v3   ;;  %v68_v5 = vld [vmem:[%s2137_s2 + $0x8] sm:$0xff]  ;;  %v70_v7 = vld [vmem:[%s2137_s2 + $0x18] sm:$0xff] }
   0x3   :  { %v1366_v8 = vpack.c.bf16 %v68_v5, %v67_v4  ;;  %v35_v9 = vld [vmem:[%s2138_s0] sm:$0xff]  ;;  %v1370_v11 = vpack.c.bf16 %v70_v7, %v69_v6  ;;  %v54_v12 = vld [vmem:[%s2136_s1 + $0x18] sm:$0xff]  ;;  %v36_v13 = vld [vmem:[%s2138_s0 + $0x8] sm:$0xff]  ;;  %v1651_v47 = vshrl.u32 %v152_v46, 7 }
   0x4   :  { %v43_v10 = vld [vmem:[%s2138_s0 + $0x40] sm:$0xff]  ;;  %1278 = vmatprep.mubr.msk.f32.mxu0 %vm372_vm0, %v35_v9  ;;  %v44_v14 = vld [vmem:[%s2138_s0 + $0x48] sm:$0xff]  ;;  %v37_v15 = vld [vmem:[%s2138_s0 + $0x10] sm:$0xff] }
   0x5   :  { %1290 = vmatprep.mubr.msk.f32.mxu1 %vm372_vm0, %v43_v10  ;;  %1367 = vmatprep.subr.bf16.mxu0 %v1366_v8  ;;  %v45_v17 = vld [vmem:[%s2138_s0 + $0x50] sm:$0xff]  ;;  %v56_v18 = vld [vmem:[%s2136_s1 + $0x28] sm:$0xff]  ;;  %v38_v19 = vld [vmem:[%s2138_s0 + $0x18] sm:$0xff]  ;;  %v154_v48 = vsub.s32 0, %v1651_v47  ;;  %v238_v50 = vsub.s32 1, %v1651_v47  ;;  %v2147_v61 = vsub.s32 2, %v1651_v47 }
   0x6   :  { %1390 = vmatprep.subr.bf16.mxu1 %v1366_v8  ;;  %1369 = vmatpush3.bf16.msra.mxu0 %v1366_v8  ;;  %v53_v20 = vld [vmem:[%s2136_s1 + $0x10] sm:$0xff]  ;;  %v39_v21 = vld [vmem:[%s2138_s0 + $0x20] sm:$0xff]  ;;  %v46_v22 = vld [vmem:[%s2138_s0 + $0x58] sm:$0xff] }
   0x7   :  { %1392 = vmatpush3.bf16.msra.mxu1 %v1366_v8  ;;  %1400 = vset.pattern.permute.xlu1 %v1424_v0  ;;  %v58_v23 = vld [vmem:[%s2136_s1 + $0x38] sm:$0xff]  ;;  %v47_v24 = vld [vmem:[%s2138_s0 + $0x60] sm:$0xff]  ;;  %v40_v25 = vld [vmem:[%s2138_s0 + $0x28] sm:$0xff] }
   0x8   :  { %1398 = vset.pattern.permute.xlu0 %v1425_v1  ;;  %177 = vperm.xlu1 %1400, %v1487_v2   ;;  %v41_v26 = vld [vmem:[%s2138_s0 + $0x30] sm:$0xff]  ;;  %v48_v27 = vld [vmem:[%s2138_s0 + $0x68] sm:$0xff]  ;;  %v42_v30 = vld [vmem:[%s2138_s0 + $0x38] sm:$0xff] }
   0x9   :  { %74 = vperm.xlu0 %1398, %v51_v3   ;;  %1371 = vmatprep.subr.bf16.mxu0 %v1370_v11  ;;  %v60_v28 = vld [vmem:[%s2136_s1 + $0x48] sm:$0xff]  ;;  %v49_v29 = vld [vmem:[%s2138_s0 + $0x70] sm:$0xff]  ;;  %v50_v31 = vld [vmem:[%s2138_s0 + $0x78] sm:$0xff] }
   0xa   :  { %1391 = vmatprep.subr.bf16.mxu1 %v1370_v11  ;;  %1373 = vmatpush3.bf16.msra.mxu0 %v1370_v11  ;;  %v62_v32 = vld [vmem:[%s2136_s1 + $0x58] sm:$0xff]  ;;  %v1596_v33 = vld [vmem:[%s2136_s1 + $0x68] sm:$0xff]  ;;  %v55_v35 = vld [vmem:[%s2136_s1 + $0x20] sm:$0xff] }
   0xb   :  { %1393 = vmatpush3.bf16.msra.mxu1 %v1370_v11  ;;  %v1603_v34 = vld [vmem:[%s2136_s1 + $0x78] sm:$0xff]  ;;  %v57_v36 = vld [vmem:[%s2136_s1 + $0x30] sm:$0xff]  ;;  %v59_v37 = vld [vmem:[%s2136_s1 + $0x40] sm:$0xff] }
   0xc   :  { %1401 = vset.pattern.permute.xlu1 %v1426_v16  ;;  %v61_v38 = vld [vmem:[%s2136_s1 + $0x50] sm:$0xff]  ;;  %v605_v39 = vld [vmem:[%s2139_s5] sm:$0xff]  ;;  %v606_v40 = vld [vmem:[%s2139_s5 + $0x8] sm:$0xff] }
   0xd   :  { %89 = vperm.xlu0 %1398, %v54_v12   ;;  %273 = vperm.xlu1 %1401, %v51_v3   ;;  %v1374_v41 = vpack.c.bf16 %v606_v40, %v605_v39  ;;  %v607_v42 = vld [vmem:[%s2139_s5 + $0x10] sm:$0xff]  ;;  %v608_v43 = vld [vmem:[%s2139_s5 + $0x18] sm:$0xff]  ;;  %v63_v45 = vld [vmem:[%s2136_s1 + $0x60] sm:$0xff] }
   0xe   :  { %1279 = vmatmul.mubr.msk.f32.vlgmr.msra.gmra.mrb[0].mxu0 %vm372_vm0, %v36_v13  ;;  %1291 = vmatmul.mubr.msk.f32.vlgmr.msra.gmra.mrb[0].mxu1 %vm372_vm0, %v44_v14  ;;  %v1378_v44 = vpack.c.bf16 %v608_v43, %v607_v42  ;;  %v609_v49 = vld [vmem:[%s2140_s6] sm:$0x7]  ;;  %v65_v55 = vld [vmem:[%s2136_s1 + $0x70] sm:$0xff] }
   0xf   :  { %1281 = vmatprep.mubr.msk.f32.mxu0 %vm372_vm0, %v37_v15  ;;  %1293 = vmatprep.mubr.msk.f32.mxu1 %vm372_vm0, %v45_v17  ;;  %v1660_v51 = vrot.slane %v609_v49, %v154_v48  ;;  %v1662_v52 = vrot.slane %v609_v49, %v238_v50  ;;  %v1667_v53 = vld [vmem:[%s2141_s3] sm:$0x7]  ;;  %v1695_v5 = vrot.slane %v609_v49, %v2147_v61 }
  0x10   :  { %1375 = vmatprep.subr.bf16.mxu1 %v1374_v41  ;;  %v1679_v59 = vrot.slane %v1667_v53, %v154_v48  ;;  %v1682_v60 = vrot.slane %v1667_v53, %v238_v50 }
  0x11   :  { %99 = vperm.xlu0 %1398, %v56_v18   ;;  %1402 = vset.pattern.permute.xlu1 %v1425_v1 }
  0x12   :  { %1282 = vmatmul.mubr.msk.f32.gmra.mrb[2].mxu0 %vm372_vm0, %v38_v19  ;;  %84 = vperm.xlu1 %1402, %v53_v20  }
  0x13   :  { %1284 = vmatprep.mubr.msk.f32.mxu0 %vm372_vm0, %v39_v21  ;;  %1294 = vmatmul.mubr.msk.f32.gmra.mrb[2].mxu1 %vm372_vm0, %v46_v22 }
  0x14   :  { %1296 = vmatprep.mubr.msk.f32.mxu1 %vm372_vm0, %v47_v24  ;;  %1377 = vmatpush3.bf16.msra.mxu1 %v1374_v41 }
  0x15   :  { %109 = vperm.xlu0 %1398, %v58_v23   ;;  %1379 = vmatprep.subr.bf16.mxu1 %v1378_v44 }
  0x16   :  { %1285 = vmatmul.mubr.msk.f32.gmra.mrb[4].mxu0 %vm372_vm0, %v40_v25  ;;  %1403 = vset.pattern.permute.xlu1 %v1424_v0 }
  0x17   :  { %1287 = vmatprep.mubr.msk.f32.mxu0 %vm372_vm0, %v41_v26  ;;  %181 = vperm.xlu1 %1403, %v53_v20  }
  0x18   :  { %1297 = vmatmul.mubr.msk.f32.gmra.mrb[4].mxu1 %vm372_vm0, %v48_v27 }
  0x19   :  { %119 = vperm.xlu0 %1398, %v60_v28   ;;  %1299 = vmatprep.mubr.msk.f32.mxu1 %vm372_vm0, %v49_v29 }
  0x1a   :  { %1288 = vmatmul.mubr.msk.f32.gmra.mrb[6].mxu0 %vm372_vm0, %v42_v30  ;;  %1381 = vmatpush3.bf16.msra.mxu1 %v1378_v44 }
  0x1b   :  { %185 = vperm.xlu1 %1403, %v54_v12  }
  0x1c   :  { %1300 = vmatmul.mubr.msk.f32.gmra.mrb[6].mxu1 %vm372_vm0, %v50_v31 }
  0x1d   :  { %129 = vperm.xlu0 %1398, %v62_v32  }
  0x1f   :  { %1404 = vset.pattern.permute.xlu1 %v1426_v16 }
  0x20   :  { %281 = vperm.xlu1 %1404, %v53_v20  }
  0x21   :  { %139 = vperm.xlu0 %1398, %v1596_v33  }
  0x24   :  { %1405 = vset.pattern.permute.xlu1 %v1425_v1 }
  0x25   :  { %149 = vperm.xlu0 %1398, %v1603_v34   ;;  %94 = vperm.xlu1 %1405, %v55_v35  }
  0x29   :  { %1422 = vset.pattern.permute.xlu0 %v1426_v16  ;;  %1406 = vset.pattern.permute.xlu1 %v1424_v0 }
  0x2a   :  { %277 = vperm.xlu0 %1422, %v1487_v2   ;;  %189 = vperm.xlu1 %1406, %v55_v35  }
  0x2e   :  { %285 = vperm.xlu0 %1422, %v54_v12   ;;  %193 = vperm.xlu1 %1406, %v56_v18  }
  0x32   :  { %293 = vperm.xlu0 %1422, %v56_v18   ;;  %1407 = vset.pattern.permute.xlu1 %v1426_v16 }
  0x33   :  { %289 = vperm.xlu1 %1407, %v55_v35  }
  0x36   :  { %301 = vperm.xlu0 %1422, %v58_v23  }
  0x37   :  { %1408 = vset.pattern.permute.xlu1 %v1425_v1 }
  0x38   :  { %104 = vperm.xlu1 %1408, %v57_v36  }
  0x3a   :  { %309 = vperm.xlu0 %1422, %v60_v28  }
  0x3c   :  { %1409 = vset.pattern.permute.xlu1 %v1424_v0 }
  0x3d   :  { %197 = vperm.xlu1 %1409, %v57_v36  }
  0x3e   :  { %317 = vperm.xlu0 %1422, %v62_v32  }
  0x41   :  { %201 = vperm.xlu1 %1409, %v58_v23  }
  0x42   :  { %325 = vperm.xlu0 %1422, %v1596_v33  }
  0x45   :  { %1410 = vset.pattern.permute.xlu1 %v1426_v16 }
  0x46   :  { %333 = vperm.xlu0 %1422, %v1603_v34   ;;  %297 = vperm.xlu1 %1410, %v57_v36  }
  0x4a   :  { %1411 = vset.pattern.permute.xlu1 %v1425_v1 }
  0x4b   :  { %114 = vperm.xlu1 %1411, %v59_v37  }
  0x4f   :  { %1412 = vset.pattern.permute.xlu1 %v1424_v0 }
  0x50   :  { %205 = vperm.xlu1 %1412, %v59_v37  }
  0x54   :  { %209 = vperm.xlu1 %1412, %v60_v28  }
  0x58   :  { %1413 = vset.pattern.permute.xlu1 %v1426_v16 }
  0x59   :  { %305 = vperm.xlu1 %1413, %v59_v37  }
  0x5d   :  { %1414 = vset.pattern.permute.xlu1 %v1425_v1 }
  0x5e   :  { %124 = vperm.xlu1 %1414, %v61_v38  }
  0x62   :  { %1415 = vset.pattern.permute.xlu1 %v1424_v0 }
  0x63   :  { %213 = vperm.xlu1 %1415, %v61_v38  }
  0x67   :  { %217 = vperm.xlu1 %1415, %v62_v32  }
  0x6b   :  { %1416 = vset.pattern.permute.xlu1 %v1426_v16 }
  0x6c   :  { %313 = vperm.xlu1 %1416, %v61_v38  }
  0x70   :  { %1417 = vset.pattern.permute.xlu1 %v1425_v1 }
  0x71   :  { %134 = vperm.xlu1 %1417, %v63_v45  }
  0x75   :  { %1418 = vset.pattern.permute.xlu1 %v1424_v0 }
  0x76   :  { %221 = vperm.xlu1 %1418, %v63_v45  }
  0x7a   :  { %225 = vperm.xlu1 %1418, %v1596_v33  }
  0x7e   :  { %1419 = vset.pattern.permute.xlu1 %v1426_v16 }
  0x7f   :  { %321 = vperm.xlu1 %1419, %v63_v45  }
  0x81   :  { %v80_v54 = vpop.permute.xlu1 %79  ;;  %v1672_v56 = vpop.permute.xlu0 %173 }
  0x82   :  { %v615_v57 = vmul.f32 %v1660_v51, %v80_v54  ;;  %v634_v58 = vmul.f32 %v1662_v52, %v1672_v56  ;;  %v157_v2 = vmul.f32 %v1679_v59, %v80_v54 }
  0x83   :  { %1420 = vset.pattern.permute.xlu1 %v1425_v1 }
  0x84   :  { %144 = vperm.xlu1 %1420, %v65_v55  }
  0x87   :  { %v178_v62 = vpop.permute.xlu1 %177 }
  0x88   :  { %v1685_v63 = vpop.permute.xlu0 %74  ;;  %v241_v3 = vmul.f32 %v1682_v60, %v178_v62  ;;  %v635_v4 = vmul.f32 %v1662_v52, %v178_v62  ;;  %1421 = vset.pattern.permute.xlu1 %v1424_v0 }
  0x89   :  { %v614_v1 = vmul.f32 %v1660_v51, %v1685_v63  ;;  %229 = vperm.xlu1 %1421, %v65_v55  }
  0x8a   :  { %v1697_v6 = vadd.f32 %v241_v3, %v157_v2  ;;  %v651_v7 = vadd.f32 %v635_v4, %v615_v57 }
  0x8b   :  { %v650_v8 = vadd.f32 %v634_v58, %v614_v1 }
  0x8c   :  { %v1699_v9 = vpop.permute.xlu0 %89  ;;  %v1701_v10 = vpop.permute.xlu1 %273 }
  0x8d   :  { %v617_v11 = vmul.f32 %v1660_v51, %v1699_v9  ;;  %v670_v0 = vmul.f32 %v1695_v5, %v1701_v10  ;;  %233 = vperm.xlu1 %1421, %v1603_v34  }
  0x8f   :  { %v1710_v13 = vadd.f32 %v670_v0, %v650_v8 }
  0x90   :  { %v1708_v12 = vpop.permute.xlu0 %99 }
  0x91   :  { %v619_v14 = vmul.f32 %v1660_v51, %v1708_v12  ;;  %1423 = vset.pattern.permute.xlu1 %v1426_v16  ;;  %v1715_v15 = vpop.permute.xlu1 %84 }
  0x92   :  { %v616_v17 = vmul.f32 %v1660_v51, %v1715_v15  ;;  %329 = vperm.xlu1 %1423, %v65_v55  }
  0x94   :  { %v1719_v18 = vpop.permute.xlu0 %109 }
  0x95   :  { %v621_v19 = vmul.f32 %v1660_v51, %v1719_v18 }
  0x96   :  { %v1723_v20 = vpop.permute.xlu1 %181 }
  0x97   :  { %v636_v21 = vmul.f32 %v1662_v52, %v1723_v20 }
  0x98   :  { %v1727_v22 = vpop.permute.xlu0 %119 }
  0x99   :  { %v1731_v16 = vmul.f32 %v1660_v51, %v1727_v22  ;;  %v652_v23 = vadd.f32 %v636_v21, %v616_v17 }
  0x9a   :  { %v1733_v24 = vpop.permute.xlu1 %185 }
  0x9b   :  { %v637_v25 = vmul.f32 %v1662_v52, %v1733_v24 }
  0x9c   :  { %v1737_v26 = vpop.permute.xlu0 %129 }
  0x9d   :  { %v1741_v27 = vmul.f32 %v1660_v51, %v1737_v26  ;;  %v653_v28 = vadd.f32 %v637_v25, %v617_v11 }
  0x9f   :  { %v1743_v29 = vpop.permute.xlu1 %281 }
  0xa0   :  { %v1745_v30 = vpop.permute.xlu0 %139  ;;  %v672_v31 = vmul.f32 %v1695_v5, %v1743_v29 }
  0xa1   :  { %v1751_v32 = vmul.f32 %v1660_v51, %v1745_v30 }
  0xa2   :  { %v1753_v33 = vadd.f32 %v672_v31, %v652_v23 }
  0xa4   :  { %v1755_v34 = vpop.permute.xlu0 %149  ;;  %v1757_v35 = vpop.permute.xlu1 %94 }
  0xa5   :  { %v1761_v36 = vmul.f32 %v1660_v51, %v1755_v34  ;;  %v618_v37 = vmul.f32 %v1660_v51, %v1757_v35 }
  0xa9   :  { %v278_v38 = vpop.permute.xlu0 %277  ;;  %v1766_v40 = vpop.permute.xlu1 %189 }
  0xaa   :  { %v671_v39 = vmul.f32 %v1695_v5, %v278_v38  ;;  %v638_v41 = vmul.f32 %v1662_v52, %v1766_v40 }
  0xac   :  { %v1770_v42 = vadd.f32 %v671_v39, %v651_v7  ;;  %v654_v43 = vadd.f32 %v638_v41, %v618_v37 }
  0xad   :  { %v286_v44 = vpop.permute.xlu0 %285  ;;  %v194_v46 = vpop.permute.xlu1 %193 }
  0xae   :  { %v673_v45 = vmul.f32 %v1695_v5, %v286_v44  ;;  %v639_v48 = vmul.f32 %v1662_v52, %v194_v46 }
  0xb0   :  { %v1774_v49 = vadd.f32 %v673_v45, %v653_v28  ;;  %v655_v50 = vadd.f32 %v639_v48, %v619_v14 }
  0xb1   :  { %v294_v54 = vpop.permute.xlu0 %293 }
  0xb2   :  { %v675_v55 = vmul.f32 %v1695_v5, %v294_v54  ;;  %v290_v57 = vpop.permute.xlu1 %289 }
  0xb3   :  { %v674_v58 = vmul.f32 %v1695_v5, %v290_v57 }
  0xb4   :  { %v1778_v62 = vadd.f32 %v675_v55, %v655_v50 }
  0xb5   :  { %v1780_v2 = vpop.permute.xlu0 %301  ;;  %v1784_v4 = vadd.f32 %v674_v58, %v654_v43 }
  0xb6   :  { %2148 = vst [vmem:[#allocation2_spill] sm:$0xff] %v1778_v62  ;;  %v677_v3 = vmul.f32 %v1695_v5, %v1780_v2 }
  0xb7   :  { %2149 = vst [vmem:[#allocation3_spill] sm:$0xff] %v1784_v4  ;;  %v1786_v1 = vpop.permute.xlu1 %104 }
  0xb8   :  { %v620_v7 = vmul.f32 %v1660_v51, %v1786_v1 }
  0xb9   :  { %v1790_v8 = vpop.permute.xlu0 %309 }
  0xba   :  { %v679_v11 = vmul.f32 %v1695_v5, %v1790_v8 }
  0xbc   :  { %v1794_v0 = vpop.permute.xlu1 %197 }
  0xbd   :  { %v1796_v14 = vpop.permute.xlu0 %317  ;;  %v640_v17 = vmul.f32 %v1662_v52, %v1794_v0 }
  0xbe   :  { %v1802_v21 = vmul.f32 %v1695_v5, %v1796_v14 }
  0xbf   :  { %v656_v23 = vadd.f32 %v640_v17, %v620_v7 }
  0xc0   :  { %v202_v25 = vpop.permute.xlu1 %201 }
  0xc1   :  { %v1804_v28 = vpop.permute.xlu0 %325  ;;  %v641_v31 = vmul.f32 %v1662_v52, %v202_v25 }
  0xc2   :  { %v1809_v37 = vmul.f32 %v1695_v5, %v1804_v28 }
  0xc3   :  { %v657_v39 = vadd.f32 %v641_v31, %v621_v19 }
  0xc5   :  { %v1811_v41 = vpop.permute.xlu0 %333  ;;  %v1813_v43 = vpop.permute.xlu1 %297  ;;  %v1819_v48 = vadd.f32 %v677_v3, %v657_v39  ;;  %v240_v3 = vmul.f32 %v1682_v60, %v1672_v56  ;;  %v156_v39 = vmul.f32 %v1679_v59, %v1685_v63  ;;  %v161_v56 = vmul.f32 %v1679_v59, %v1708_v12 }
  0xc6   :  { %v1817_v45 = vmul.f32 %v1695_v5, %v1811_v41  ;;  %v676_v50 = vmul.f32 %v1695_v5, %v1813_v43 }
  0xc7   :  { %2150 = vst [vmem:[#allocation4_spill] sm:$0xff] %v1819_v48  ;;  %v256_v4 = vadd.f32 %v240_v3, %v156_v39 }
  0xc8   :  { %v1823_v55 = vadd.f32 %v676_v50, %v656_v23  ;;  %v2152_v23 = vsub.s32 2, %v1651_v47  ;;  %v242_v47 = vmul.f32 %v1682_v60, %v1723_v20  ;;  %v244_v20 = vmul.f32 %v1682_v60, %v1766_v40 }
  0xc9   :  { %v163_v40 = vmul.f32 %v1679_v59, %v1719_v18  ;;  %v246_v18 = vmul.f32 %v1682_v60, %v1794_v0 }
  0xca   :  { %2151 = vst [vmem:[#allocation5_spill] sm:$0xff] %v1823_v55  ;;  %v1825_v58 = vpop.permute.xlu1 %114  ;;  %v1839_v50 = vrot.slane %v1667_v53, %v2152_v23  ;;  %v245_v53 = vmul.f32 %v1682_v60, %v194_v46 }
  0xcb   :  { %v622_v19 = vmul.f32 %v1660_v51, %v1825_v58 }
  0xcc   :  { %v342_v12 = vmul.f32 %v1839_v50, %v1743_v29  ;;  %v343_v46 = vmul.f32 %v1839_v50, %v286_v44  ;;  %v345_v39 = vmul.f32 %v1839_v50, %v294_v54  ;;  %v165_v44 = vmul.f32 %v1679_v59, %v1727_v22 }
  0xcd   :  { %v247_v54 = vmul.f32 %v1682_v60, %v202_v25  ;;  %v347_v22 = vmul.f32 %v1839_v50, %v1780_v2  ;;  %v349_v0 = vmul.f32 %v1839_v50, %v1790_v8 }
  0xcf   :  { %v206_v7 = vpop.permute.xlu1 %205 }
  0xd0   :  { %v642_v17 = vmul.f32 %v1662_v52, %v206_v7 }
  0xd2   :  { %v658_v31 = vadd.f32 %v642_v17, %v622_v19  ;;  %v340_v19 = vmul.f32 %v1839_v50, %v1701_v10  ;;  %v158_v10 = vmul.f32 %v1679_v59, %v1715_v15 }
  0xd3   :  { %v1830_v61 = vpop.permute.xlu1 %209 }
  0xd4   :  { %v643_v55 = vmul.f32 %v1662_v52, %v1830_v61  ;;  %v258_v3 = vadd.f32 %v242_v47, %v158_v10  ;;  %v356_v23 = vadd.f32 %v340_v19, %v256_v4  ;;  %v167_v4 = vmul.f32 %v1679_v59, %v1737_v26 }
  0xd5   :  { %v249_v8 = vmul.f32 %v1682_v60, %v1830_v61 }
  0xd6   :  { %v659_v48 = vadd.f32 %v643_v55, %v1731_v16  ;;  %v159_v16 = vmul.f32 %v1679_v59, %v1699_v9  ;;  %v243_v55 = vmul.f32 %v1682_v60, %v1733_v24  ;;  %v261_v9 = vadd.f32 %v245_v53, %v161_v56 }
  0xd7   :  { %v358_v53 = vadd.f32 %v342_v12, %v258_v3 }
  0xd8   :  { %v306_v17 = vpop.permute.xlu1 %305  ;;  %v1846_v62 = vadd.f32 %v679_v11, %v659_v48  ;;  %v341_v11 = vmul.f32 %v1839_v50, %v278_v38  ;;  %v259_v15 = vadd.f32 %v243_v55, %v159_v16  ;;  %v160_v38 = vmul.f32 %v1679_v59, %v1757_v35 }
  0xd9   :  { %v678_v63 = vmul.f32 %v1695_v5, %v306_v17  ;;  %v361_v26 = vadd.f32 %v345_v39, %v261_v9  ;;  %v162_v16 = vmul.f32 %v1679_v59, %v1786_v1  ;;  %v248_v55 = vmul.f32 %v1682_v60, %v206_v7 }
  0xda   :  { %v357_v56 = vadd.f32 %v341_v11, %v1697_v6  ;;  %v260_v19 = vadd.f32 %v244_v20, %v160_v38  ;;  %v359_v47 = vadd.f32 %v343_v46, %v259_v15  ;;  %v263_v46 = vadd.f32 %v247_v54, %v163_v40 }
  0xdb   :  { %v1861_v48 = vadd.f32 %v678_v63, %v658_v31  ;;  %v344_v31 = vmul.f32 %v1839_v50, %v290_v57  ;;  %v1887_v57 = vld [vmem:[%s2142_s4] ss:$0 sm:$0xff]  ;;  %v164_v9 = vmul.f32 %v1679_v59, %v1825_v58  ;;  %v348_v39 = vmul.f32 %v1839_v50, %v306_v17 }
  0xdc   :  { %v262_v15 = vadd.f32 %v246_v18, %v162_v16  ;;  %v346_v38 = vmul.f32 %v1839_v50, %v1813_v43  ;;  %v363_v18 = vadd.f32 %v347_v22, %v263_v46 }
  0xdd   :  { %v1869_v24 = vpop.permute.xlu1 %124  ;;  %v360_v12 = vadd.f32 %v344_v31, %v260_v19  ;;  %v264_v54 = vadd.f32 %v248_v55, %v164_v9 }
  0xde   :  { %v624_v29 = vmul.f32 %v1660_v51, %v1869_v24  ;;  %v362_v9 = vadd.f32 %v346_v38, %v262_v15  ;;  %v166_v22 = vmul.f32 %v1679_v59, %v1869_v24 }
  0xe1   :  { %v1280_v35 = vpop.f32.mrb[0].mxu0  ;;  %v1893_v6 = vpop.f32.mrb[0].mxu1 }
  0xe2   :  { %v493_v25 = vadd.f32 %v1280_v35, %v357_v56  ;;  %v487_v63 = vpop.f32.mrb[1].mxu0  ;;  %v527_v11 = vpop.f32.mrb[1].mxu1 }
  0xe3   :  { %v488_v10 = vadd.f32 %v487_v63, %v356_v23  ;;  %v214_v20 = vpop.permute.xlu1 %213  ;;  %v351_v23 = vmul.f32 %v1839_v50, %v1796_v14 }
  0xe4   :  { %v574_v2 = vadd.f32 %v1887_v57, %v493_v25  ;;  %v644_v3 = vmul.f32 %v1662_v52, %v214_v20  ;;  %v250_v43 = vmul.f32 %v1682_v60, %v214_v20 }
  0xe5   :  { %v573_v1 = vadd.f32 %v1887_v57, %v488_v10  ;;  %v1283_v7 = vpop.f32.mrb[2].mxu0  ;;  %v364_v10 = vadd.f32 %v348_v39, %v264_v54 }
  0xe6   :  { %v660_v31 = vadd.f32 %v644_v3, %v624_v29  ;;  %v497_v40 = vpop.f32.mrb[3].mxu0  ;;  %v503_v58 = vadd.f32 %v1283_v7, %v359_v47  ;;  %v1295_v35 = vpop.f32.mrb[2].mxu1  ;;  %v590_v25 = vmax.f32 %v574_v2, 0.0  ;;  %v265_v47 = vadd.f32 %v249_v8, %v165_v44 }
  0xe7   :  { %v589_v56 = vmax.f32 %v573_v1, 0.0  ;;  %v498_v19 = vadd.f32 %v497_v40, %v358_v53  ;;  %v218_v17 = vpop.permute.xlu1 %217  ;;  %v537_v16 = vpop.f32.mrb[3].mxu1  ;;  %v528_v46 = vadd.f32 %v527_v11, %v364_v10 }
  0xe8   :  { %v251_v63 = vmul.f32 %v1682_v60, %v218_v17  ;;  %v645_v14 = vmul.f32 %v1662_v52, %v218_v17  ;;  %v576_v61 = vadd.f32 %v1887_v57, %v503_v58  ;;  %v365_v38 = vadd.f32 %v349_v0, %v265_v47 }
  0xe9   :  { %v575_v29 = vadd.f32 %v1887_v57, %v498_v19  ;;  %v1286_v55 = vpop.f32.mrb[4].mxu0  ;;  %1310 = vmatprep.mubr.msk.f32.mxu1 %vm372_vm0, %v589_v56  ;;  %v581_v0 = vadd.f32 %v1887_v57, %v528_v46 }
  0xea   :  { %v661_v53 = vadd.f32 %v645_v14, %v1741_v27  ;;  %v513_v2 = vadd.f32 %v1286_v55, %v361_v26  ;;  %v507_v3 = vpop.f32.mrb[5].mxu0  ;;  %1311 = vmatmul.mubr.msk.f32.vlgmr.msra.gmra.mrb[8].mxu1 %vm372_vm0, %v590_v25  ;;  %v592_v7 = vmax.f32 %v576_v61, 0.0  ;;  %v267_v40 = vadd.f32 %v251_v63, %v167_v4 }
  0xeb   :  { %v591_v20 = vmax.f32 %v575_v29, 0.0  ;;  %v508_v39 = vadd.f32 %v507_v3, %v360_v12  ;;  %v1922_v1 = vpop.f32.mrb[4].mxu1  ;;  %v314_v44 = vpop.permute.xlu1 %313  ;;  %v266_v26 = vadd.f32 %v250_v43, %v166_v22  ;;  %v533_v63 = vadd.f32 %v1893_v6, %v365_v38 }
  0xec   :  { %v578_v54 = vadd.f32 %v1887_v57, %v513_v2  ;;  %v1925_v8 = vpop.f32.mrb[5].mxu1  ;;  %v1928_v27 = vadd.f32 %v1802_v21, %v661_v53  ;;  %v350_v24 = vmul.f32 %v1839_v50, %v314_v44  ;;  %v680_v11 = vmul.f32 %v1695_v5, %v314_v44 }
  0xed   :  { %v577_v15 = vadd.f32 %v1887_v57, %v508_v39  ;;  %v1289_v12 = vpop.f32.mrb[6].mxu0  ;;  %1313 = vmatprep.mubr.msk.f32.mxu1 %vm372_vm0, %v591_v20  ;;  %v367_v43 = vadd.f32 %v351_v23, %v267_v40  ;;  %v582_v6 = vadd.f32 %v1887_v57, %v533_v63  ;;  %v597_v23 = vmax.f32 %v581_v0, 0.0 }
  0xee   :  { %v523_v4 = vadd.f32 %v1289_v12, %v363_v18  ;;  %v517_v56 = vpop.f32.mrb[7].mxu0  ;;  %1314 = vmatmul.mubr.msk.f32.gmra.mrb[10].mxu1 %vm372_vm0, %v592_v7  ;;  %v366_v17 = vadd.f32 %v350_v24, %v266_v26  ;;  %v1937_v25 = vadd.f32 %v680_v11, %v660_v31  ;;  %v594_v14 = vmax.f32 %v578_v54, 0.0 }
  0xef   :  { %v593_v58 = vmax.f32 %v577_v15, 0.0  ;;  %v518_v19 = vadd.f32 %v517_v56, %v362_v9  ;;  %v1935_v21 = vpop.f32.mrb[6].mxu1  ;;  %v543_v2 = vadd.f32 %v1295_v35, %v367_v43  ;;  %v598_v22 = vmax.f32 %v582_v6, 0.0 }
  0xf0   :  { %v580_v10 = vadd.f32 %v1887_v57, %v523_v4  ;;  %v1941_v61 = vpop.f32.mrb[7].mxu1  ;;  %v538_v29 = vadd.f32 %v537_v16, %v366_v17  ;;  %v135_v55 = vpop.permute.xlu1 %134  ;;  %v169_v35 = vmul.f32 %v1679_v59, %v1745_v30  ;;  %v353_v15 = vmul.f32 %v1839_v50, %v1804_v28 }
  0xf1   :  { %v579_v18 = vadd.f32 %v1887_v57, %v518_v19  ;;  %1316 = vmatprep.mubr.msk.f32.mxu1 %vm372_vm0, %v593_v58  ;;  %v626_v47 = vmul.f32 %v1660_v51, %v135_v55  ;;  %v584_v46 = vadd.f32 %v1887_v57, %v543_v2  ;;  %v168_v12 = vmul.f32 %v1679_v59, %v135_v55 }
  0xf2   :  { %1317 = vmatmul.mubr.msk.f32.gmra.mrb[12].mxu1 %vm372_vm0, %v594_v14  ;;  %v596_v53 = vmax.f32 %v580_v10, 0.0  ;;  %v583_v3 = vadd.f32 %v1887_v57, %v538_v29 }
  0xf3   :  { %v595_v31 = vmax.f32 %v579_v18, 0.0  ;;  %v600_v44 = vmax.f32 %v584_v46, 0.0 }
  0xf4   :  { %v599_v20 = vmax.f32 %v583_v3, 0.0 }
  0xf5   :  { %1319 = vmatprep.mubr.msk.f32.mxu1 %vm372_vm0, %v595_v31  ;;  %v222_v9 = vpop.permute.xlu1 %221 }
  0xf6   :  { %1320 = vmatmul.mubr.msk.f32.gmra.mrb[14].mxu1 %vm372_vm0, %v596_v53  ;;  %v646_v16 = vmul.f32 %v1662_v52, %v222_v9  ;;  %v252_v26 = vmul.f32 %v1682_v60, %v222_v9  ;;  %v355_v53 = vmul.f32 %v1839_v50, %v1811_v41 }
  0xf7   :  { %1322 = vmatprep.mubr.msk.f32.mxu1 %vm372_vm0, %v597_v23 }
  0xf8   :  { %v662_v39 = vadd.f32 %v646_v16, %v626_v47  ;;  %v268_v56 = vadd.f32 %v252_v26, %v168_v12 }
  0xf9   :  { %v226_v7 = vpop.permute.xlu1 %225 }
  0xfa   :  { %1323 = vmatmul.mubr.msk.f32.gmra.mrb[16].mxu1 %vm372_vm0, %v598_v22  ;;  %v253_v40 = vmul.f32 %v1682_v60, %v226_v7  ;;  %v647_v54 = vmul.f32 %v1662_v52, %v226_v7 }
  0xfb   :  { %1325 = vmatprep.mubr.msk.f32.mxu1 %vm372_vm0, %v599_v20 }
  0xfc   :  { %v269_v24 = vadd.f32 %v253_v40, %v169_v35  ;;  %v663_v11 = vadd.f32 %v647_v54, %v1751_v32  ;;  %v2019_v54 = vld [vmem:[%s2144_s7] ss:$0 sm:$0xff] }
  0xfe   :  { %1326 = vmatmul.mubr.msk.f32.gmra.mrb[18].mxu1 %vm372_vm0, %v600_v44  ;;  %v322_v30 = vpop.permute.xlu1 %321  ;;  %v369_v38 = vadd.f32 %v353_v15, %v269_v24  ;;  %v1968_v4 = vadd.f32 %v1809_v37, %v663_v11 }
  0xff   :  { %v352_v58 = vmul.f32 %v1839_v50, %v322_v30  ;;  %v682_v19 = vmul.f32 %v1695_v5, %v322_v30 }
 0x100   :  { %v553_v17 = vadd.f32 %v1922_v1, %v369_v38 }
 0x101   :  { %v368_v28 = vadd.f32 %v352_v58, %v268_v56  ;;  %v1973_v63 = vadd.f32 %v682_v19, %v662_v39 }
 0x102   :  { %v586_v10 = vadd.f32 %v1887_v57, %v553_v17 }
 0x103   :  { %v548_v32 = vadd.f32 %v1925_v8, %v368_v28  ;;  %v145_v14 = vpop.permute.xlu1 %144  ;;  %v171_v8 = vmul.f32 %v1679_v59, %v1755_v34 }
 0x104   :  { %v628_v43 = vmul.f32 %v1660_v51, %v145_v14  ;;  %v602_v18 = vmax.f32 %v586_v10, 0.0  ;;  %v170_v3 = vmul.f32 %v1679_v59, %v145_v14 }
 0x105   :  { %v585_v37 = vadd.f32 %v1887_v57, %v548_v32 }
 0x107   :  { %v601_v0 = vmax.f32 %v585_v37, 0.0 }
 0x108   :  { %v230_v29 = vpop.permute.xlu1 %229 }
 0x109   :  { %v648_v55 = vmul.f32 %v1662_v52, %v230_v29  ;;  %1328 = vmatprep.mubr.msk.f32.mxu1 %vm372_vm0, %v601_v0  ;;  %v254_v6 = vmul.f32 %v1682_v60, %v230_v29  ;;  %v2155_v29 = vld [vmem:[#allocation4_spill] sm:$0xff] }
 0x10a   :  { %1329 = vmatmul.mubr.msk.f32.gmra.mrb[20].mxu1 %vm372_vm0, %v602_v18 }
 0x10b   :  { %v664_v1 = vadd.f32 %v648_v55, %v628_v43  ;;  %v270_v34 = vadd.f32 %v254_v6, %v170_v3  ;;  %v2154_v43 = vld [vmem:[#allocation3_spill] sm:$0xff] }
 0x10c   :  { %v234_v47 = vpop.permute.xlu1 %233 }
 0x10d   :  { %v255_v31 = vmul.f32 %v1682_v60, %v234_v47  ;;  %v649_v51 = vmul.f32 %v1662_v52, %v234_v47 }
 0x10f   :  { %v271_v2 = vadd.f32 %v255_v31, %v171_v8  ;;  %v665_v23 = vadd.f32 %v649_v51, %v1761_v36  ;;  %v2156_v8 = vld [vmem:[#allocation5_spill] sm:$0xff] }
 0x111   :  { %v330_v9 = vpop.permute.xlu1 %329  ;;  %v371_v16 = vadd.f32 %v355_v53, %v271_v2  ;;  %v1992_v22 = vadd.f32 %v1817_v45, %v665_v23  ;;  %v935_v45 = vld [vmem:[%s2143_s8 + $0x8] sm:$0xff] }
 0x112   :  { %v354_v46 = vmul.f32 %v1839_v50, %v330_v9  ;;  %v684_v52 = vmul.f32 %v1695_v5, %v330_v9  ;;  %v934_v5 = vld [vmem:[%s2143_s8] sm:$0xff] }
 0x113   :  { %v563_v60 = vadd.f32 %v1935_v21, %v371_v16  ;;  %v1382_v50 = vpack.c.bf16 %v935_v45, %v934_v5  ;;  %v937_v21 = vld [vmem:[%s2143_s8 + $0x18] sm:$0xff] }
 0x114   :  { %v370_v20 = vadd.f32 %v354_v46, %v270_v34  ;;  %v1997_v39 = vadd.f32 %v684_v52, %v664_v1 }
 0x115   :  { %v588_v36 = vadd.f32 %v1887_v57, %v563_v60  ;;  %1383 = vmatprep.subr.bf16.mxu0 %v1382_v50 }
 0x116   :  { %v558_v41 = vadd.f32 %v1941_v61, %v370_v20  ;;  %1385 = vmatpush3.bf16.msra.mxu0 %v1382_v50 }
 0x117   :  { %v604_v35 = vmax.f32 %v588_v36, 0.0 }
 0x118   :  { %v587_v59 = vadd.f32 %v1887_v57, %v558_v41  ;;  %v936_v57 = vld [vmem:[%s2143_s8 + $0x10] sm:$0xff] }
 0x119   :  { %v1386_v61 = vpack.c.bf16 %v937_v21, %v936_v57 }
 0x11a   :  { %v603_v7 = vmax.f32 %v587_v59, 0.0 }
 0x11b   :  { %1387 = vmatprep.subr.bf16.mxu0 %v1386_v61 }
 0x11c   :  { %1331 = vmatprep.mubr.msk.f32.mxu1 %vm372_vm0, %v603_v7  ;;  %1389 = vmatpush3.bf16.msra.mxu0 %v1386_v61 }
 0x11d   :  { %1332 = vmatmul.mubr.msk.f32.gmra.mrb[22].mxu1 %vm372_vm0, %v604_v35 }
 0x1bd   :  { %v1312_v40 = vpop.f32.mrb[8].mxu1 }
 0x1be   :  { %v822_v44 = vadd.f32 %v1312_v40, %v1770_v42  ;;  %v816_v26 = vpop.f32.mrb[9].mxu1 }
 0x1bf   :  { %v817_v15 = vadd.f32 %v816_v26, %v1710_v13  ;;  %v2153_v13 = vld [vmem:[#allocation2_spill] sm:$0xff] }
 0x1c0   :  { %v903_v24 = vadd.f32 %v2019_v54, %v822_v44 }
 0x1c1   :  { %v902_v11 = vadd.f32 %v2019_v54, %v817_v15  ;;  %v1315_v12 = vpop.f32.mrb[10].mxu1 }
 0x1c2   :  { %v832_v30 = vadd.f32 %v1315_v12, %v1774_v49  ;;  %v826_v38 = vpop.f32.mrb[11].mxu1  ;;  %v919_v19 = vmax.f32 %v903_v24, 0.0 }
 0x1c3   :  { %v918_v56 = vmax.f32 %v902_v11, 0.0  ;;  %v827_v58 = vadd.f32 %v826_v38, %v1753_v33 }
 0x1c4   :  { %v905_v17 = vadd.f32 %v2019_v54, %v832_v30  ;;  %v1193_v30 = vld [vmem:[%s2145_s9] ss:$0 sm:$0xff] }
 0x1c5   :  { %v904_v28 = vadd.f32 %v2019_v54, %v827_v58  ;;  %v1318_v42 = vpop.f32.mrb[12].mxu1  ;;  %1342 = vmatprep.mubr.msk.f32.mxu0 %vm372_vm0, %v918_v56 }
 0x1c6   :  { %v842_v32 = vadd.f32 %v1318_v42, %v2153_v13  ;;  %v836_v14 = vpop.f32.mrb[13].mxu1  ;;  %1343 = vmatmul.mubr.msk.f32.vlgmr.msra.gmra.mrb[8].mxu0 %vm372_vm0, %v919_v19  ;;  %v921_v37 = vmax.f32 %v905_v17, 0.0 }
 0x1c7   :  { %v920_v10 = vmax.f32 %v904_v28, 0.0  ;;  %v837_v49 = vadd.f32 %v836_v14, %v2154_v43 }
 0x1c8   :  { %v907_v0 = vadd.f32 %v2019_v54, %v842_v32 }
 0x1c9   :  { %v906_v33 = vadd.f32 %v2019_v54, %v837_v49  ;;  %v1321_v18 = vpop.f32.mrb[14].mxu1  ;;  %1345 = vmatprep.mubr.msk.f32.mxu0 %vm372_vm0, %v920_v10 }
 0x1ca   :  { %v852_v55 = vadd.f32 %v1321_v18, %v2155_v29  ;;  %v846_v1 = vpop.f32.mrb[15].mxu1  ;;  %1346 = vmatmul.mubr.msk.f32.gmra.mrb[10].mxu0 %vm372_vm0, %v921_v37  ;;  %v923_v51 = vmax.f32 %v907_v0, 0.0 }
 0x1cb   :  { %v922_v47 = vmax.f32 %v906_v33, 0.0  ;;  %v847_v31 = vadd.f32 %v846_v1, %v2156_v8 }
 0x1cc   :  { %v909_v6 = vadd.f32 %v2019_v54, %v852_v55 }
 0x1cd   :  { %v908_v53 = vadd.f32 %v2019_v54, %v847_v31  ;;  %v1324_v2 = vpop.f32.mrb[16].mxu1  ;;  %1348 = vmatprep.mubr.msk.f32.mxu0 %vm372_vm0, %v922_v47 }
 0x1ce   :  { %v862_v23 = vadd.f32 %v1324_v2, %v1846_v62  ;;  %v856_v3 = vpop.f32.mrb[17].mxu1  ;;  %1349 = vmatmul.mubr.msk.f32.gmra.mrb[12].mxu0 %vm372_vm0, %v923_v51  ;;  %v925_v34 = vmax.f32 %v909_v6, 0.0 }
 0x1cf   :  { %v924_v9 = vmax.f32 %v908_v53, 0.0  ;;  %v857_v16 = vadd.f32 %v856_v3, %v1861_v48 }
 0x1d0   :  { %v911_v46 = vadd.f32 %v2019_v54, %v862_v23 }
 0x1d1   :  { %v910_v52 = vadd.f32 %v2019_v54, %v857_v16  ;;  %v1327_v60 = vpop.f32.mrb[18].mxu1  ;;  %1351 = vmatprep.mubr.msk.f32.mxu0 %vm372_vm0, %v924_v9 }
 0x1d2   :  { %v872_v20 = vadd.f32 %v1327_v60, %v1928_v27  ;;  %v866_v41 = vpop.f32.mrb[19].mxu1  ;;  %1352 = vmatmul.mubr.msk.f32.gmra.mrb[14].mxu0 %vm372_vm0, %v925_v34  ;;  %v927_v59 = vmax.f32 %v911_v46, 0.0 }
 0x1d3   :  { %v926_v62 = vmax.f32 %v910_v52, 0.0  ;;  %v867_v36 = vadd.f32 %v866_v41, %v1937_v25 }
 0x1d4   :  { %v913_v7 = vadd.f32 %v2019_v54, %v872_v20 }
 0x1d5   :  { %v912_v48 = vadd.f32 %v2019_v54, %v867_v36  ;;  %1354 = vmatprep.mubr.msk.f32.mxu0 %vm372_vm0, %v926_v62 }
 0x1d6   :  { %1355 = vmatmul.mubr.msk.f32.gmra.mrb[16].mxu0 %vm372_vm0, %v927_v59  ;;  %v929_v5 = vmax.f32 %v913_v7, 0.0 }
 0x1d7   :  { %v928_v35 = vmax.f32 %v912_v48, 0.0 }
 0x1d9   :  { %1357 = vmatprep.mubr.msk.f32.mxu0 %vm372_vm0, %v928_v35 }
 0x1da   :  { %1358 = vmatmul.mubr.msk.f32.gmra.mrb[18].mxu0 %vm372_vm0, %v929_v5 }
 0x1dd   :  { %v1330_v27 = vpop.f32.mrb[20].mxu1 }
 0x1de   :  { %v882_v45 = vadd.f32 %v1330_v27, %v1968_v4  ;;  %v876_v50 = vpop.f32.mrb[21].mxu1 }
 0x1df   :  { %v877_v25 = vadd.f32 %v876_v50, %v1973_v63 }
 0x1e0   :  { %v915_v57 = vadd.f32 %v2019_v54, %v882_v45 }
 0x1e1   :  { %v914_v21 = vadd.f32 %v2019_v54, %v877_v25 }
 0x1e2   :  { %v931_v40 = vmax.f32 %v915_v57, 0.0 }
 0x1e3   :  { %v930_v61 = vmax.f32 %v914_v21, 0.0 }
 0x1e5   :  { %1360 = vmatprep.mubr.msk.f32.mxu0 %vm372_vm0, %v930_v61 }
 0x1e6   :  { %1361 = vmatmul.mubr.msk.f32.gmra.mrb[20].mxu0 %vm372_vm0, %v931_v40 }
 0x1f0   :  { %v1333_v44 = vpop.f32.mrb[22].mxu1 }
 0x1f1   :  { %v892_v26 = vadd.f32 %v1333_v44, %v1992_v22  ;;  %v886_v15 = vpop.f32.mrb[23].mxu1 }
 0x1f2   :  { %v887_v24 = vadd.f32 %v886_v15, %v1997_v39 }
 0x1f3   :  { %v917_v4 = vadd.f32 %v2019_v54, %v892_v26 }
 0x1f4   :  { %v916_v63 = vadd.f32 %v2019_v54, %v887_v24 }
 0x1f5   :  { %v933_v12 = vmax.f32 %v917_v4, 0.0 }
 0x1f6   :  { %v932_v11 = vmax.f32 %v916_v63, 0.0 }
 0x1f8   :  { %1363 = vmatprep.mubr.msk.f32.mxu0 %vm372_vm0, %v932_v11 }
 0x1f9   :  { %1364 = vmatmul.mubr.msk.f32.gmra.mrb[22].mxu0 %vm372_vm0, %v933_v12 }
 0x299   :  { %v1344_v38 = vpop.f32.mrb[8].mxu0 }
 0x29a   :  { %v1065_v22 = vadd.f32 %v1344_v38, %v1193_v30  ;;  %v1059_v56 = vpop.f32.mrb[9].mxu0 }
 0x29b   :  { %v1060_v58 = vadd.f32 %v1193_v30, %v1059_v56 }
 0x29c   :  { %1140 = vst.msk [vmem:[%s2146_s10 + $0x8] sm:$0xff] %vm1138_vm1, %v1065_v22 }
 0x29d   :  { %1139 = vst.msk [vmem:[%s2146_s10] sm:$0xff] %vm1138_vm1, %v1060_v58  ;;  %v1347_v39 = vpop.f32.mrb[10].mxu0 }
 0x29e   :  { %v1075_v54 = vadd.f32 %v1347_v39, %v1193_v30  ;;  %v1069_v19 = vpop.f32.mrb[11].mxu0 }
 0x29f   :  { %v1070_v17 = vadd.f32 %v1193_v30, %v1069_v19 }
 0x2a0   :  { %1142 = vst.msk [vmem:[%s2146_s10 + $0x18] sm:$0xff] %vm1138_vm1, %v1075_v54 }
 0x2a1   :  { %1141 = vst.msk [vmem:[%s2146_s10 + $0x10] sm:$0xff] %vm1138_vm1, %v1070_v17  ;;  %v1350_v28 = vpop.f32.mrb[12].mxu0 }
 0x2a2   :  { %v1085_v42 = vadd.f32 %v1350_v28, %v1193_v30  ;;  %v1079_v13 = vpop.f32.mrb[13].mxu0 }
 0x2a3   :  { %v1080_v32 = vadd.f32 %v1193_v30, %v1079_v13 }
 0x2a4   :  { %1144 = vst.msk [vmem:[%s2146_s10 + $0x28] sm:$0xff] %vm1138_vm1, %v1085_v42 }
 0x2a5   :  { %1143 = vst.msk [vmem:[%s2146_s10 + $0x20] sm:$0xff] %vm1138_vm1, %v1080_v32  ;;  %v1353_v14 = vpop.f32.mrb[14].mxu0 }
 0x2a6   :  { %v1095_v10 = vadd.f32 %v1353_v14, %v1193_v30  ;;  %v1089_v43 = vpop.f32.mrb[15].mxu0 }
 0x2a7   :  { %v1090_v49 = vadd.f32 %v1193_v30, %v1089_v43 }
 0x2a8   :  { %1146 = vst.msk [vmem:[%s2146_s10 + $0x38] sm:$0xff] %vm1138_vm1, %v1095_v10 }
 0x2a9   :  { %1145 = vst.msk [vmem:[%s2146_s10 + $0x30] sm:$0xff] %vm1138_vm1, %v1090_v49  ;;  %v1356_v37 = vpop.f32.mrb[16].mxu0 }
 0x2aa   :  { %v1105_v0 = vadd.f32 %v1356_v37, %v1193_v30  ;;  %v1099_v33 = vpop.f32.mrb[17].mxu0 }
 0x2ab   :  { %v1100_v18 = vadd.f32 %v1193_v30, %v1099_v33 }
 0x2ac   :  { %1148 = vst.msk [vmem:[%s2146_s10 + $0x48] sm:$0xff] %vm1138_vm1, %v1105_v0 }
 0x2ad   :  { %1147 = vst.msk [vmem:[%s2146_s10 + $0x40] sm:$0xff] %vm1138_vm1, %v1100_v18  ;;  %v1359_v29 = vpop.f32.mrb[18].mxu0 }
 0x2ae   :  { %v1115_v55 = vadd.f32 %v1359_v29, %v1193_v30  ;;  %v1109_v1 = vpop.f32.mrb[19].mxu0 }
 0x2af   :  { %v1110_v47 = vadd.f32 %v1193_v30, %v1109_v1 }
 0x2b0   :  { %1150 = vst.msk [vmem:[%s2146_s10 + $0x58] sm:$0xff] %vm1138_vm1, %v1115_v55 }
 0x2b1   :  { %1149 = vst.msk [vmem:[%s2146_s10 + $0x50] sm:$0xff] %vm1138_vm1, %v1110_v47 }
 0x2b9   :  { %v1362_v8 = vpop.f32.mrb[20].mxu0 }
 0x2ba   :  { %v1125_v31 = vadd.f32 %v1362_v8, %v1193_v30  ;;  %v1119_v51 = vpop.f32.mrb[21].mxu0 }
 0x2bb   :  { %v1120_v6 = vadd.f32 %v1193_v30, %v1119_v51 }
 0x2bc   :  { %1152 = vst.msk [vmem:[%s2146_s10 + $0x68] sm:$0xff] %vm1138_vm1, %v1125_v31 }
 0x2bd   :  { %1151 = vst.msk [vmem:[%s2146_s10 + $0x60] sm:$0xff] %vm1138_vm1, %v1120_v6 }
 0x2cc   :  { %v1365_v53 = vpop.f32.mrb[22].mxu0 }
 0x2cd   :  { %v1135_v2 = vadd.f32 %v1365_v53, %v1193_v30  ;;  %v1129_v23 = vpop.f32.mrb[23].mxu0 }
 0x2ce   :  { %v1130_v3 = vadd.f32 %v1193_v30, %v1129_v23 }
 0x2cf   :  { %1154 = vst.msk [vmem:[%s2146_s10 + $0x78] sm:$0xff] %vm1138_vm1, %v1135_v2 }
 0x2d0   :  { %1153 = vst.msk [vmem:[%s2146_s10 + $0x70] sm:$0xff] %vm1138_vm1, %v1130_v3 }

</bundles_post_ra>
